<compile_context>
chip_gen: v7x
topology: tpu7x:2x2x1
jax: 0.10.0
libtpu: 0.0.40
codegen_flags: <defaults>
</compile_context>

<pallas_src>
import math

import jax
import jax.numpy as jnp
from jax.experimental import pallas as pl
from jax.experimental.pallas import tpu as pltpu


_TILE_TARGET_BYTES = 2 * 1024 * 1024   # per (tS, D) VMEM buffer
_SMALL_TOTAL_BYTES = 2 * 1024 * 1024   # below this, use one block / one step


def _pe_add_tile_kernel(x_ref, pe_ref, o_ref):
    # x_ref / o_ref: (tS, D) tile of one batch element (batch dim squeezed).
    # pe_ref:        (tS, D) positional-encoding tile, shared across the batch.
    o_ref[...] = x_ref[...] + pe_ref[...]


def _pe_add_whole_kernel(x_ref, pe_ref, o_ref):
    # Whole-array path for tiny problems: x_ref (B, S, D), pe_ref (S, D).
    o_ref[...] = x_ref[...] + pe_ref[...][None, :, :]


def build_pe_table(d_model: int, max_len: int = 5000, dtype=jnp.float32):
    """Replicates the PyTorch buffer: pe[pos, 0::2] = sin, pe[pos, 1::2] = cos."""
    position = jnp.arange(max_len, dtype=jnp.float32)[:, None]            # (max_len, 1)
    div_term = jnp.exp(
        jnp.arange(0, d_model, 2, dtype=jnp.float32)
        * (-math.log(10000.0) / d_model)
    )                                                                      # (d_model//2,)
    angles = position * div_term                                           # (max_len, d_model//2)
    sin = jnp.sin(angles)
    cos = jnp.cos(angles)
    pe = jnp.stack([sin, cos], axis=-1).reshape(max_len, d_model)          # 0::2=sin, 1::2=cos
    return pe.astype(dtype)


def positional_encoding_forward(x: jax.Array, pe_table: jax.Array) -> jax.Array:
    """x: (B, S, D); pe_table: (max_len, D). Returns x + pe[:S] (eval-mode dropout)."""
    B, S, D = x.shape
    max_len = pe_table.shape[0]
    assert S <= max_len, "sequence length exceeds positional-encoding table"

    itemsize = jnp.dtype(x.dtype).itemsize
    # Cast the PE table once in the wrapper (halves PE HBM/VMEM traffic for
    # bf16 x, removes the per-tile VALU cast).
    pe = pe_table.astype(x.dtype)

    # Lane-axis sanity: D must be a multiple of 128 for the tiled BlockSpecs.
    # d_model=512 satisfies this; anything else takes the fused XLA add.
    if D % 128 != 0:
        return x + pe[None, :S, :]

    # --- tiny-problem path: one block, one grid step -------------------------
    if B * S * D * itemsize <= _SMALL_TOTAL_BYTES:
        return pl.pallas_call(
            _pe_add_whole_kernel,
            out_shape=jax.ShapeDtypeStruct((B, S, D), x.dtype),
        )(x, pe[:S, :])  # pe[:S] copy is negligible at this size

    # --- tiled streaming path -------------------------------------------------
    # Rows per tile so one (tS, D) buffer is ~_TILE_TARGET_BYTES, multiple of 8
    # (f32 sublane; also legal for bf16 since 8 | tS).
    tS = max(8, (_TILE_TARGET_BYTES // (D * itemsize)) // 8 * 8)
    if tS >= S:
        tS = S
        if S % 8 != 0:
            # Full-S block: slice pe so the PE block equals its full array dims,
            # keeping the (8, 128) BlockSpec rule satisfied for ragged S.
            pe = pe[:S, :]
    elif S % 8 != 0:
        # TODO(synk): pad-S Pallas path for large ragged sequence lengths;
        # fall back to the fused XLA add (still a single memory-bound pass).
        return x + pe[None, :S, :]

    num_s_tiles = pl.cdiv(S, tS)
    # Batch is the innermost (fastest-varying) grid axis -> the PE block index
    # (s, 0) is unchanged across batch steps and its DMA is skipped.
    grid = (num_s_tiles, B)

    return pl.pallas_call(
        _pe_add_tile_kernel,
        out_shape=jax.ShapeDtypeStruct((B, S, D), x.dtype),
        grid_spec=pltpu.PrefetchScalarGridSpec(
            num_scalar_prefetch=0,
            grid=grid,
            in_specs=[
                # x tile: squeeze the size-1 batch dim -> kernel sees (tS, D).
                pl.BlockSpec((pl.Squeezed(), tS, D), lambda s, b: (b, s, 0)),
                # PE tile windowed straight out of the full table (no pe[:S] copy).
                pl.BlockSpec((tS, D), lambda s, b: (s, 0)),
            ],
            out_specs=pl.BlockSpec((pl.Squeezed(), tS, D), lambda s, b: (b, s, 0)),
        ),
        compiler_params=pltpu.CompilerParams(
            dimension_semantics=("parallel", "parallel"),
        ),
    )(x, pe)


if __name__ == "__main__":
    D_MODEL = 512  # matches the module's d_model
    pe_table = build_pe_table(D_MODEL, max_len=5000)

    k1, k2 = jax.random.split(jax.random.PRNGKey(0))

    # Small shape consistent with the module (hits the single-block path).
    B, S = 2, 8
    x = jax.random.normal(k1, (B, S, D_MODEL), dtype=jnp.float32)
    out = jax.block_until_ready(positional_encoding_forward(x, pe_table))
    ref = x + pe_table[None, :S, :]
    assert out.shape == (B, S, D_MODEL)
    assert jnp.allclose(out, ref, atol=1e-6), "mismatch vs reference (small path)"

    # Moderate shape exercising the tiled/streaming path (grid = (S/tS, B)).
    B2, S2 = 2, 2048
    x2 = jax.random.normal(k2, (B2, S2, D_MODEL), dtype=jnp.float32)
    out2 = jax.block_until_ready(positional_encoding_forward(x2, pe_table))
    ref2 = x2 + pe_table[None, :S2, :]
    assert jnp.allclose(out2, ref2, atol=1e-6), "mismatch vs reference (tiled path)"

    print("KERNEL_OK")
</pallas_src>

<mosaic_0001>
module attributes {stable_mosaic.version = 11 : i64} {
  func.func @_pe_add_whole_kernel(%arg0: memref<2x8x512xf32, #tpu.memory_space<vmem>>, %arg1: memref<8x512xf32, #tpu.memory_space<vmem>>, %arg2: memref<2x8x512xf32, #tpu.memory_space<vmem>>) attributes {dimension_semantics = [], scalar_prefetch = 0 : i64, scratch_operands = 0 : i64, tpu.core_type = #tpu.core_type<tc>} {
    %c0 = arith.constant 0 : index
    %c0_0 = arith.constant 0 : index
    %c0_1 = arith.constant 0 : index
    %0 = vector.load %arg0[%c0, %c0_0, %c0_1] : memref<2x8x512xf32, #tpu.memory_space<vmem>>, vector<2x8x512xf32>
    %c0_2 = arith.constant 0 : index
    %c0_3 = arith.constant 0 : index
    %1 = vector.load %arg1[%c0_2, %c0_3] : memref<8x512xf32, #tpu.memory_space<vmem>>, vector<8x512xf32>
    %2 = vector.shape_cast %1 : vector<8x512xf32> to vector<1x8x512xf32>
    %3 = vector.broadcast %2 : vector<1x8x512xf32> to vector<2x8x512xf32>
    %4 = arith.addf %0, %3 : vector<2x8x512xf32>
    %c0_4 = arith.constant 0 : index
    %c0_5 = arith.constant 0 : index
    %c0_6 = arith.constant 0 : index
    %5 = vector.load %arg2[%c0_4, %c0_5, %c0_6] : memref<2x8x512xf32, #tpu.memory_space<vmem>>, vector<2x8x512xf32>
    tpu.vector_store %arg2[%c0_4, %c0_5, %c0_6], %4 {strides = array<i32>} : memref<2x8x512xf32, #tpu.memory_space<vmem>>, vector<2x8x512xf32>,
    return
  }
}

</mosaic_0001>

<bundles_post_ra>
// kernel: tpu_custom_call.1
= control target key start
LH: loop header
LB: loop body
LE: loop exit
PB: predicated region body
PF: predicated region fallthrough
CT: control target
= control target key end

     0   :  { %7 = vsyncpa [#allocation3], 0  ;;  %s223_s0 = inlined_call_operand.hbm [shape: f32[2,8,512], index: 0, kind: input, shape index: {}]   ;;  %s224_s1 = inlined_call_operand.hbm [shape: f32[8,512], index: 1, kind: input, shape index: {}]   ;;  %s225_s2 = inlined_call_operand.hbm [shape: f32[2,8,512], index: 2, kind: output, shape index: {}]  }
   0x1   :  { %8 = vsyncpa [#allocation6], 0 }
   0x2   :  { %9 = vsyncpa [#allocation4], 0  ;;  %s161_s9 = smov [#allocation2]   ;;  %s89_s13 = scalar_lea.hbm %s223_s0, 1024 }
   0x3   :  { %s15_s10 = sshll.u32 %s161_s9, 4  ;;  %p90_p0 = scmp.ne.s32.totalorder %s223_s0, %s89_s13  ;;  %s16_s10 = int_to_ptr.vmem [resolvable:$true] %s15_s10 }
   0x4   :  { %p93_p1 = scmp.lt.u32.totalorder %s89_s13, %s223_s0 }
   0x6   :  { %p95_p2 = pnand %p93_p1, %p90_p0 }
   0x8   :  { %98 = shalt.err (!%p95_p2)
}
   0x9   :  { %s99_s18 = scalar_lea.vmem %s16_s10, 1024  ;;  %p104_p4 = scmp.lt.s32.totalorder %s16_s10, %s16_s10 }
   0xa   :  { %p100_p3 = scmp.ne.s32.totalorder %s16_s10, %s99_s18  ;;  %p105_p5 = scmp.lt.s32.totalorder %s99_s18, %s99_s18 }
   0xc   :  { %p106_p6 = por %p105_p5, %p104_p4 }
   0xe   :  { %p107_p7 = pnand %p106_p6, %p100_p3 }
  0x10   :  { %110 = shalt.err (!%p107_p7)
}
  0x11   :  { %s162_s19 = smov 512   ;;  %s163_s20 = smov 32  }
  0x12   :  { %21 = dma.hbm_to_vmem [thread:$0]  %s223_s0, 1024, %s16_s10, [#allocation3], %s162_s19, %s162_s19, %s163_s20  }
  0x13   :  { %s164_s23 = smov [#allocation5]   ;;  %s111_s27 = scalar_lea.hbm %s224_s1, 512 }
  0x14   :  { %s28_s24 = sshll.u32 %s164_s23, 4  ;;  %p112_p8 = scmp.ne.s32.totalorder %s224_s1, %s111_s27  ;;  %s29_s24 = int_to_ptr.vmem [resolvable:$true] %s28_s24 }
  0x15   :  { %p115_p9 = scmp.lt.u32.totalorder %s111_s27, %s224_s1 }
  0x17   :  { %p117_p10 = pnand %p115_p9, %p112_p8 }
  0x19   :  { %120 = shalt.err (!%p117_p10)
}
  0x1a   :  { %s121_s4 = scalar_lea.vmem %s29_s24, 512  ;;  %p126_p12 = scmp.lt.s32.totalorder %s29_s24, %s29_s24 }
  0x1b   :  { %p122_p11 = scmp.ne.s32.totalorder %s29_s24, %s121_s4  ;;  %p127_p13 = scmp.lt.s32.totalorder %s121_s4, %s121_s4 }
  0x1d   :  { %p128_p0 = por %p127_p13, %p126_p12 }
  0x1f   :  { %p129_p1 = pnand %p128_p0, %p122_p11 }
  0x21   :  { %132 = shalt.err (!%p129_p1)
}
  0x22   :  { %31 = dma.hbm_to_vmem [thread:$0]  %s224_s1, 512, %s29_s24, [#allocation6]  }
  0x23   :  { %155 = dma.done.wait [#allocation3], 1024  }
  0x24   :  { %156 = vsyncadd [#allocation3], 4294966272 }
  0x25   :  { %157 = dma.done.wait [#allocation6], 512  }
  0x26   :  { %158 = vsyncadd [#allocation6], 4294966784  ;;  %v38_v0 = vld [vmem:[#allocation2] sm:$0xff]  ;;  %v39_v2 = vld [vmem:[#allocation2 + $0x8] sm:$0xff]  ;;  %s165_s6 = smov [#allocation7]  }
  0x27   :  { %v46_v1 = vld [vmem:[#allocation5] sm:$0xff]  ;;  %v47_v4 = vld [vmem:[#allocation5 + $0x8] sm:$0xff]  ;;  %v40_v5 = vld [vmem:[#allocation2 + $0x10] sm:$0xff]  ;;  %s71_s7 = sshll.u32 %s165_s6, 4  ;;  %s72_s7 = int_to_ptr.vmem [resolvable:$true] %s71_s7 }
  0x28   :  { %v50_v3 = vadd.f32 %v46_v1, %v38_v0  ;;  %v48_v6 = vld [vmem:[#allocation5 + $0x10] sm:$0xff]  ;;  %v51_v7 = vadd.f32 %v47_v4, %v39_v2  ;;  %v41_v9 = vld [vmem:[#allocation2 + $0x18] sm:$0xff]  ;;  %v42_v11 = vld [vmem:[#allocation2 + $0x20] sm:$0xff]  ;;  %s133_s1 = scalar_lea.vmem %s72_s7, 1024  ;;  %p138_p3 = scmp.lt.s32.totalorder %s72_s7, %s72_s7 }
  0x29   :  { %v52_v8 = vadd.f32 %v48_v6, %v40_v5  ;;  %v49_v10 = vld [vmem:[#allocation5 + $0x18] sm:$0xff]  ;;  %v54_v13 = vadd.f32 %v46_v1, %v42_v11  ;;  %v43_v14 = vld [vmem:[#allocation2 + $0x28] sm:$0xff]  ;;  %v44_v15 = vld [vmem:[#allocation2 + $0x30] sm:$0xff]  ;;  %p134_p2 = scmp.ne.s32.totalorder %s72_s7, %s133_s1  ;;  %p139_p4 = scmp.lt.s32.totalorder %s133_s1, %s133_s1 }
  0x2a   :  { %58 = vst [vmem:[#allocation7] sm:$0xff] %v50_v3  ;;  %v53_v12 = vadd.f32 %v49_v10, %v41_v9  ;;  %v45_v16 = vld [vmem:[#allocation2 + $0x38] sm:$0xff]  ;;  %59 = vst [vmem:[#allocation7 + $0x8] sm:$0xff] %v51_v7  ;;  %v55_v17 = vadd.f32 %v47_v4, %v43_v14  ;;  %v56_v18 = vadd.f32 %v48_v6, %v44_v15 }
  0x2b   :  { %60 = vst [vmem:[#allocation7 + $0x10] sm:$0xff] %v52_v8  ;;  %v57_v19 = vadd.f32 %v49_v10, %v45_v16  ;;  %62 = vst [vmem:[#allocation7 + $0x20] sm:$0xff] %v54_v13  ;;  %p140_p5 = por %p139_p4, %p138_p3 }
  0x2c   :  { %61 = vst [vmem:[#allocation7 + $0x18] sm:$0xff] %v53_v12  ;;  %63 = vst [vmem:[#allocation7 + $0x28] sm:$0xff] %v55_v17 }
  0x2d   :  { %64 = vst [vmem:[#allocation7 + $0x30] sm:$0xff] %v56_v18  ;;  %65 = vst [vmem:[#allocation7 + $0x38] sm:$0xff] %v57_v19  ;;  %p141_p6 = pnand %p140_p5, %p134_p2 }
  0x2f   :  { %144 = shalt.err (!%p141_p6)
}
  0x30   :  { %s145_s10 = scalar_lea.hbm %s225_s2, 1024 }
  0x31   :  { %p146_p7 = scmp.ne.s32.totalorder %s225_s2, %s145_s10  ;;  %p149_p8 = scmp.lt.u32.totalorder %s145_s10, %s225_s2 }
  0x33   :  { %p151_p9 = pnand %p149_p8, %p146_p7 }
  0x35   :  { %154 = shalt.err (!%p151_p9)
}
  0x36   :  { %77 = dma.vmem_to_hbm [thread:$0]  %s72_s7, 1024, %s225_s2, [#allocation4], %s162_s19, %s162_s19, %s163_s20  }
  0x37   :  { %159 = dma.done.wait [#allocation4], 1024  }
  0x38   :  { %160 = vsyncadd [#allocation4], 4294966272 }
  0x39   :  { %81 = vsyncpa [#allocation3], 1 }
  0x3a   :  { %82 = vsyncpa [#allocation6], 1 }
  0x3b   :  { %83 = vsyncpa [#allocation4], 1 }

</bundles_post_ra>
